<compile_context>
chip_gen: v5e
topology: v5e:2x2
jax: 0.10.0
libtpu: 0.0.40
codegen_flags: <defaults>
</compile_context>

<pallas_src>
import jax
import jax.numpy as jnp
import numpy as np
from jax.experimental import pallas as pl
from jax.experimental.pallas import tpu as pltpu


def _fused_sem_encoder_kernel(adjA_ref, x_ref, xm_ref, logits_ref):
    """Single-step fused SEMEncoder forward.

    adjA_ref   : (D, D)    f32  (I - adj_A1^T), VMEM resident
    x_ref      : (B, D, F) input block (whole array, single grid step)
    xm_ref     : (B, D, F) output:  x - meanF
    logits_ref : (B, D, F) output:  adj_A @ (x - meanF)
    """
    B = x_ref.shape[0]
    x = x_ref[...].astype(jnp.float32)      # cast in VMEM; no HBM f32 duplicate
    adjA = adjA_ref[...]

    # meanF == batch mean of x (adj_A_inv cancels adj_A exactly).
    # Pure VPU reduction over the leading axis — no MXU, no inverse.
    mean_f = x[0]
    for b in range(1, B):
        mean_f = mean_f + x[b]
    mean_f = mean_f * (1.0 / B)             # (D, F)

    # Per-batch canonical 2-D MXU dots.  B is small for this module (whole
    # problem fits in VMEM by construction), so the static unroll is cheap
    # and every dot lowers to the canonical (D,D)@(D,F) MXU form.
    for b in range(B):
        xm_b = x[b] - mean_f                # (D, F)
        xm_ref[b] = xm_b.astype(xm_ref.dtype)
        logits_ref[b] = jnp.dot(
            adjA, xm_b, preferred_element_type=jnp.float32
        ).astype(logits_ref.dtype)


def sem_encoder_forward(inputs, adj_A_param, rel_rec=None, rel_send=None):
    """Pallas implementation of SEMEncoder.forward.

    inputs:      (B, D, F)  = (batch, num_nodes, feature_dim)
    adj_A_param: (D, D)     the nn.Parameter
    rel_rec / rel_send are unused by the PyTorch forward (signature parity).

    Returns (x - meanF, logits, adj_A1, adj_A, adj_A_param).
    """
    B, D, F = inputs.shape
    out_dtype = inputs.dtype

    # --- tiny (D, D) parameter preprocessing: plain-JAX glue ----------------
    adj_A1 = jnp.sinh(3.0 * adj_A_param)
    eye = jnp.eye(D, dtype=adj_A1.dtype)
    adj_A = (eye - adj_A1.T).astype(jnp.float32)      # preprocess_adj_new
    # preprocess_adj_new1 (the LU inverse) is intentionally NOT computed:
    #   inv(adj_A) @ mean_b(adj_A @ x_b) == mean_b(x_b)   (exact identity)

    # Single-step fused kernel: the whole problem stays resident in VMEM.
    footprint = 4 * (D * D + 3 * B * D * F)           # f32 working set, bytes
    assert footprint < 48 * 1024 * 1024, (
        "fused single-step SEMEncoder kernel assumes the problem fits in VMEM"
    )
    # TODO(synk): for B*D*F beyond VMEM, switch to a two-pass batch-tiled
    # pipeline (pass 1: resident-accumulator batch mean, no matmuls;
    # pass 2: parallel grid over batch tiles computing xm / logits).

    vmem_limit = int(min(max(4 * footprint, 32 * 1024 * 1024),
                         64 * 1024 * 1024))           # safe on v5e/v6e/v7x

    xm, logits = pl.pallas_call(
        _fused_sem_encoder_kernel,
        out_shape=(
            jax.ShapeDtypeStruct((B, D, F), out_dtype),
            jax.ShapeDtypeStruct((B, D, F), out_dtype),
        ),
        grid_spec=pltpu.PrefetchScalarGridSpec(
            num_scalar_prefetch=0,
            grid=(1,),                                 # single step: no pipeline overhead
            in_specs=[
                pl.BlockSpec((D, D), lambda i: (0, 0)),        # adj_A
                pl.BlockSpec((B, D, F), lambda i: (0, 0, 0)),  # inputs (full array)
            ],
            out_specs=[
                pl.BlockSpec((B, D, F), lambda i: (0, 0, 0)),  # x - meanF
                pl.BlockSpec((B, D, F), lambda i: (0, 0, 0)),  # logits
            ],
        ),
        compiler_params=pltpu.CompilerParams(
            dimension_semantics=("arbitrary",),
            vmem_limit_bytes=vmem_limit,
        ),
    )(adj_A, inputs)

    # TODO(synk): PyTorch returns self.z / self.z_positive, which are never
    # defined in SEMEncoder.__init__ (set externally); omitted here.
    return xm, logits, adj_A1, adj_A, adj_A_param


def _reference(inputs, adj_A_param):
    """Full original math (including the explicit inverse) for validation."""
    adj_A1 = jnp.sinh(3.0 * adj_A_param)
    eye = jnp.eye(adj_A1.shape[0], dtype=adj_A1.dtype)
    adj_A = eye - adj_A1.T
    adj_A_inv = jnp.linalg.inv(eye - adj_A1.T)
    Ax = jnp.einsum("ij,bjf->bif", adj_A, inputs)
    meanF = adj_A_inv @ jnp.mean(Ax, axis=0)
    xm = inputs - meanF[None]
    logits = jnp.einsum("ij,bjf->bif", adj_A, xm)
    return xm, logits


if __name__ == "__main__":
    key = jax.random.PRNGKey(0)
    k1, k2 = jax.random.split(key)

    B, D, F = 2, 8, 16  # batch, num_nodes, feature dim (small; full-dim blocks)

    # Deterministic small-scale init so (I - adj_A1^T) is well conditioned.
    adj_A_param = 0.1 * jax.random.normal(k1, (D, D), dtype=jnp.float32)
    inputs = jax.random.normal(k2, (B, D, F), dtype=jnp.float32)

    xm, logits, adj_A1, adj_A, _ = sem_encoder_forward(inputs, adj_A_param)
    jax.block_until_ready((xm, logits))

    xm_ref, logits_ref = _reference(inputs, adj_A_param)
    np.testing.assert_allclose(np.asarray(xm), np.asarray(xm_ref),
                               rtol=1e-4, atol=1e-4)
    np.testing.assert_allclose(np.asarray(logits), np.asarray(logits_ref),
                               rtol=1e-4, atol=1e-4)

    print("KERNEL_OK")
</pallas_src>

<mosaic_0001>
module attributes {stable_mosaic.version = 11 : i64} {
  func.func @_fused_sem_encoder_kernel(%arg0: i32, %arg1: memref<8x8xf32, #tpu.memory_space<vmem>>, %arg2: memref<2x8x16xf32, #tpu.memory_space<vmem>>, %arg3: memref<2x8x16xf32, #tpu.memory_space<vmem>>, %arg4: memref<2x8x16xf32, #tpu.memory_space<vmem>>) attributes {dimension_semantics = [#tpu.dimension_semantics<arbitrary>], iteration_bounds = array<i64: 1>, scalar_prefetch = 0 : i64, scratch_operands = 0 : i64, tpu.core_type = #tpu.core_type<tc>, window_params = [{pipeline_mode = #tpu.pipeline_mode<synchronous>, transform_indices = @transform_0, window_bounds = array<i64: 8, 8>}, {pipeline_mode = #tpu.pipeline_mode<synchronous>, transform_indices = @transform_1, window_bounds = array<i64: 2, 8, 16>}, {pipeline_mode = #tpu.pipeline_mode<synchronous>, transform_indices = @transform_2, window_bounds = array<i64: 2, 8, 16>}, {pipeline_mode = #tpu.pipeline_mode<synchronous>, transform_indices = @transform_3, window_bounds = array<i64: 2, 8, 16>}]} {
    %c0 = arith.constant 0 : index
    %c0_0 = arith.constant 0 : index
    %c0_1 = arith.constant 0 : index
    %0 = vector.load %arg2[%c0, %c0_0, %c0_1] : memref<2x8x16xf32, #tpu.memory_space<vmem>>, vector<2x8x16xf32>
    %c0_2 = arith.constant 0 : index
    %c0_3 = arith.constant 0 : index
    %1 = vector.load %arg1[%c0_2, %c0_3] : memref<8x8xf32, #tpu.memory_space<vmem>>, vector<8x8xf32>
    %2 = vector.extract_strided_slice %0 {offsets = [0, 0, 0], sizes = [1, 8, 16], strides = [1, 1, 1]} : vector<2x8x16xf32> to vector<1x8x16xf32>
    %3 = vector.shape_cast %2 : vector<1x8x16xf32> to vector<8x16xf32>
    %4 = vector.extract_strided_slice %0 {offsets = [1, 0, 0], sizes = [1, 8, 16], strides = [1, 1, 1]} : vector<2x8x16xf32> to vector<1x8x16xf32>
    %5 = vector.shape_cast %4 : vector<1x8x16xf32> to vector<8x16xf32>
    %6 = arith.addf %3, %5 : vector<8x16xf32>
    %cst = arith.constant 5.000000e-01 : f32
    %7 = vector.broadcast %cst : f32 to vector<8x16xf32>
    %8 = arith.mulf %6, %7 : vector<8x16xf32>
    %9 = vector.extract_strided_slice %0 {offsets = [0, 0, 0], sizes = [1, 8, 16], strides = [1, 1, 1]} : vector<2x8x16xf32> to vector<1x8x16xf32>
    %10 = vector.shape_cast %9 : vector<1x8x16xf32> to vector<8x16xf32>
    %11 = arith.subf %10, %8 : vector<8x16xf32>
    %c0_4 = arith.constant 0 : index
    %c0_5 = arith.constant 0 : index
    %c0_6 = arith.constant 0 : index
    %12 = vector.load %arg3[%c0_4, %c0_5, %c0_6] : memref<2x8x16xf32, #tpu.memory_space<vmem>>, vector<1x8x16xf32>
    %13 = vector.shape_cast %12 : vector<1x8x16xf32> to vector<8x16xf32>
    %14 = vector.shape_cast %11 : vector<8x16xf32> to vector<1x8x16xf32>
    tpu.vector_store %arg3[%c0_4, %c0_5, %c0_6], %14 {strides = array<i32>} : memref<2x8x16xf32, #tpu.memory_space<vmem>>, vector<1x8x16xf32>,
    %cst_7 = arith.constant dense<0.000000e+00> : vector<8x16xf32>
    %15 = tpu.matmul %1, %11, %cst_7 {dimension_numbers = #tpu.dot_dimension_numbers<[1], [0], [0], [1], [0, 0, 1, 1], [], []>} : vector<8x8xf32>, vector<8x16xf32>, vector<8x16xf32> -> vector<8x16xf32>
    %c0_8 = arith.constant 0 : index
    %c0_9 = arith.constant 0 : index
    %c0_10 = arith.constant 0 : index
    %16 = vector.load %arg4[%c0_8, %c0_9, %c0_10] : memref<2x8x16xf32, #tpu.memory_space<vmem>>, vector<1x8x16xf32>
    %17 = vector.shape_cast %16 : vector<1x8x16xf32> to vector<8x16xf32>
    %18 = vector.shape_cast %15 : vector<8x16xf32> to vector<1x8x16xf32>
    tpu.vector_store %arg4[%c0_8, %c0_9, %c0_10], %18 {strides = array<i32>} : memref<2x8x16xf32, #tpu.memory_space<vmem>>, vector<1x8x16xf32>,
    %19 = vector.extract_strided_slice %0 {offsets = [1, 0, 0], sizes = [1, 8, 16], strides = [1, 1, 1]} : vector<2x8x16xf32> to vector<1x8x16xf32>
    %20 = vector.shape_cast %19 : vector<1x8x16xf32> to vector<8x16xf32>
    %21 = arith.subf %20, %8 : vector<8x16xf32>
    %c1 = arith.constant 1 : index
    %c0_11 = arith.constant 0 : index
    %c0_12 = arith.constant 0 : index
    %22 = vector.load %arg3[%c1, %c0_11, %c0_12] : memref<2x8x16xf32, #tpu.memory_space<vmem>>, vector<1x8x16xf32>
    %23 = vector.shape_cast %22 : vector<1x8x16xf32> to vector<8x16xf32>
    %24 = vector.shape_cast %21 : vector<8x16xf32> to vector<1x8x16xf32>
    tpu.vector_store %arg3[%c1, %c0_11, %c0_12], %24 {strides = array<i32>} : memref<2x8x16xf32, #tpu.memory_space<vmem>>, vector<1x8x16xf32>,
    %cst_13 = arith.constant dense<0.000000e+00> : vector<8x16xf32>
    %25 = tpu.matmul %1, %21, %cst_13 {dimension_numbers = #tpu.dot_dimension_numbers<[1], [0], [0], [1], [0, 0, 1, 1], [], []>} : vector<8x8xf32>, vector<8x16xf32>, vector<8x16xf32> -> vector<8x16xf32>
    %c1_14 = arith.constant 1 : index
    %c0_15 = arith.constant 0 : index
    %c0_16 = arith.constant 0 : index
    %26 = vector.load %arg4[%c1_14, %c0_15, %c0_16] : memref<2x8x16xf32, #tpu.memory_space<vmem>>, vector<1x8x16xf32>
    %27 = vector.shape_cast %26 : vector<1x8x16xf32> to vector<8x16xf32>
    %28 = vector.shape_cast %25 : vector<8x16xf32> to vector<1x8x16xf32>
    tpu.vector_store %arg4[%c1_14, %c0_15, %c0_16], %28 {strides = array<i32>} : memref<2x8x16xf32, #tpu.memory_space<vmem>>, vector<1x8x16xf32>,
    return
  }
  func.func @transform_0(%arg0: i32) -> (i32, i32) {
    %c0_i32 = arith.constant 0 : i32
    %c0_i32_0 = arith.constant 0 : i32
    %c0_i32_1 = arith.constant 0 : i32
    return %c0_i32, %c0_i32_0 : i32, i32
  }
  func.func @transform_1(%arg0: i32) -> (i32, i32, i32) {
    %c0_i32 = arith.constant 0 : i32
    %c0_i32_0 = arith.constant 0 : i32
    %c0_i32_1 = arith.constant 0 : i32
    %c0_i32_2 = arith.constant 0 : i32
    return %c0_i32, %c0_i32_0, %c0_i32_1 : i32, i32, i32
  }
  func.func @transform_2(%arg0: i32) -> (i32, i32, i32) {
    %c0_i32 = arith.constant 0 : i32
    %c0_i32_0 = arith.constant 0 : i32
    %c0_i32_1 = arith.constant 0 : i32
    %c0_i32_2 = arith.constant 0 : i32
    return %c0_i32, %c0_i32_0, %c0_i32_1 : i32, i32, i32
  }
  func.func @transform_3(%arg0: i32) -> (i32, i32, i32) {
    %c0_i32 = arith.constant 0 : i32
    %c0_i32_0 = arith.constant 0 : i32
    %c0_i32_1 = arith.constant 0 : i32
    %c0_i32_2 = arith.constant 0 : i32
    return %c0_i32, %c0_i32_0, %c0_i32_1 : i32, i32, i32
  }
}

</mosaic_0001>

<bundles_post_ra>
// kernel: tpu_custom_call.1
= control target key start
LH: loop header
LB: loop body
LE: loop exit
PB: predicated region body
PF: predicated region fallthrough
CT: control target
= control target key end

     0   :  { %9 = vsyncpa [#allocation3], 0  ;;  %s304_s0 = inlined_call_operand.hbm [shape: f32[8,8], index: 0, kind: input, shape index: {}]   ;;  %s305_s1 = inlined_call_operand.hbm [shape: f32[2,8,16], index: 1, kind: input, shape index: {}]   ;;  %s306_s2 = inlined_call_operand.hbm [shape: f32[2,8,16], index: 2, kind: output, shape index: {0}]   ;;  %s307_s3 = inlined_call_operand.hbm [shape: f32[2,8,16], index: 3, kind: output, shape index: {1}]  }
   0x1   :  { %10 = vsyncpa [#allocation6], 0 }
   0x2   :  { %11 = vsyncpa [#allocation4], 0 }
   0x3   :  { %12 = vsyncpa [#allocation9], 0  ;;  %s18_s14 = sshll.u32 %s304_s0, 4  ;;  %s253_s15 = smov [#allocation2]   ;;  %s19_s14 = int_to_ptr.hbm [resolvable:$true] %s18_s14 }
   0x4   :  { %s20_s16 = sshll.u32 %s253_s15, 4  ;;  %s28_s19 = sshll.u32 %s305_s1, 4  ;;  %s21_s16 = int_to_ptr.vmem [resolvable:$true] %s20_s16  ;;  %s29_s19 = int_to_ptr.hbm [resolvable:$true] %s28_s19 }
   0x5   :  { %23 = dma.hbm_to_vmem [thread:$0]  %s19_s14, 128, %s21_s16, [#allocation3]  }
   0x6   :  { %s254_s20 = smov [#allocation5]   ;;  %s255_s22 = smov 128  }
   0x7   :  { %s30_s21 = sshll.u32 %s254_s20, 4  ;;  %s256_s23 = smov 8   ;;  %s31_s21 = int_to_ptr.vmem [resolvable:$true] %s30_s21 }
   0x8   :  { %36 = dma.hbm_to_vmem [thread:$0]  %s29_s19, 256, %s31_s21, [#allocation6], %s255_s22, %s255_s22, %s256_s23  }
   0x9   :  { %245 = dma.done.wait [#allocation3], 128  }
   0xa   :  { %246 = vsyncadd [#allocation3], 4294967168 }
   0xb   :  { %247 = dma.done.wait [#allocation6], 256  }
   0xc   :  { %248 = vsyncadd [#allocation6], 4294967040  ;;  %v45_v0 = vld [vmem:[#allocation5] sm:$0xff]  ;;  %v46_v1 = vld [vmem:[#allocation5 + $0x8] sm:$0xff]  ;;  %vm51_vm0 = vcmask 130048   ;;  %vm53_vm1 = vcmask 64512  }
   0xd   :  { %v48_v2 = vadd.f32 %v46_v1, %v45_v0  ;;  %v47_v6 = vld [vmem:[#allocation2] sm:$0xff]  ;;  %s257_s0 = smov [#allocation7]   ;;  %s109_s26 = sshll.u32 %s306_s2, 4  ;;  %s110_s26 = int_to_ptr.hbm [resolvable:$true] %s109_s26 }
   0xe   :  { %s107_s1 = sshll.u32 %s257_s0, 4  ;;  %s258_s27 = smov [#allocation8]   ;;  %s108_s1 = int_to_ptr.vmem [resolvable:$true] %s107_s1 }
   0xf   :  { %v49_v3 = vmul.f32 0.5, %v48_v2  ;;  %s120_s28 = sshll.u32 %s258_s27, 4  ;;  %s122_s2 = sshll.u32 %s307_s3, 4  ;;  %s121_s28 = int_to_ptr.vmem [resolvable:$true] %s120_s28  ;;  %s123_s2 = int_to_ptr.hbm [resolvable:$true] %s122_s2 }
  0x11   :  { %v50_v4 = vsub.f32 %v45_v0, %v49_v3  ;;  %v78_v5 = vsub.f32 %v46_v1, %v49_v3 }
  0x13   :  { %72 = vmatpush.msra.mxu0 %v50_v4  ;;  %96 = vmatpush.msra.mxu1 %v78_v5  ;;  %52 = vst.msk [vmem:[#allocation7] sm:$0xff] %vm51_vm0, %v50_v4 }
  0x14   :  { %141 = vmatmul.msk.f32.vlgmr.msra.gmra.mxu0 %vm53_vm1, %v47_v6  ;;  %142 = vmatmul.msk.f32.vlgmr.msra.gmra.mxu1 %vm53_vm1, %v47_v6  ;;  %80 = vst.msk [vmem:[#allocation7 + $0x8] sm:$0xff] %vm51_vm0, %v78_v5 }
  0x15   :  { %115 = dma.vmem_to_hbm [thread:$0]  %s108_s1, 256, %s110_s26, [#allocation4], %s255_s22, %s255_s22, %s256_s23  }
  0x91   :  { %v74_v7 = vpop.f32.mrf.mxu0  ;;  %v98_v8 = vpop.f32.mrf.mxu1 }
  0x92   :  { %77 = vst.msk [vmem:[#allocation8] sm:$0xff] %vm51_vm0, %v74_v7 }
  0x93   :  { %102 = vst.msk [vmem:[#allocation8 + $0x8] sm:$0xff] %vm51_vm0, %v98_v8 }
  0x94   :  { %128 = dma.vmem_to_hbm [thread:$0]  %s121_s28, 256, %s123_s2, [#allocation9], %s255_s22, %s255_s22, %s256_s23  }
  0x95   :  { %249 = dma.done.wait [#allocation4], 256  }
  0x96   :  { %250 = vsyncadd [#allocation4], 4294967040 }
  0x97   :  { %251 = dma.done.wait [#allocation9], 256  }
  0x98   :  { %252 = vsyncadd [#allocation9], 4294967040 }
  0x99   :  { %137 = vsyncpa [#allocation3], 1 }
  0x9a   :  { %138 = vsyncpa [#allocation6], 1 }
  0x9b   :  { %139 = vsyncpa [#allocation4], 1 }
  0x9c   :  { %140 = vsyncpa [#allocation9], 1 }

</bundles_post_ra>
